<compile_context>
chip_gen: v6e
topology: v6e:2x2x1
jax: 0.10.0
libtpu: 0.0.40
codegen_flags: <defaults>
</compile_context>

<pallas_src>
import functools

import jax
import jax.numpy as jnp
from jax.experimental import pallas as pl
from jax.experimental.pallas import tpu as pltpu

LANES = 128
MAX_BLOCK_ROWS = 2048  # (2048, 128) f32 = 1 MiB per input per pipeline buffer


def _mse_partial_kernel(o_ref, t_ref, out_ref, acc_ref, *,
                        rows, block_rows, blocks_per_core, needs_mask):
    c = pl.program_id(0)           # parallel split (per-TensorCore on v7x)
    i = pl.program_id(1)           # reduction step within the split
    n_steps = pl.num_programs(1)

    @pl.when(i == 0)
    def _():
        acc_ref[...] = jnp.zeros_like(acc_ref)

    d = o_ref[...].astype(jnp.float32) - t_ref[...].astype(jnp.float32)
    sq = d * d

    if needs_mask:
        # Rows at/after `rows` are either Pallas boundary padding (unspecified
        # values) or a clamped re-read of the last real block (virtual blocks
        # past the end on the parallel split); select them to zero.
        virtual_block = c * blocks_per_core + i
        row_base = virtual_block * block_rows
        row_ids = jax.lax.broadcasted_iota(jnp.int32, sq.shape, 0)
        sq = jnp.where(row_ids < (rows - row_base), sq, 0.0)

    acc_ref[...] += sq             # vreg-wise VPU accumulate, no cross-lane work

    @pl.when(i == n_steps - 1)
    def _():
        out_ref[0, 0] = jnp.sum(acc_ref[...])   # single final cross-lane reduce


def mse_loss(output: jax.Array, target: jax.Array) -> jax.Array:
    """Equivalent of torch.nn.functional.mse_loss(output, target) (mean)."""
    assert output.shape == target.shape, (
        "shapes must match (no broadcasting in the F.mse_loss default path)")
    n_elems = output.size
    itemsize = jnp.dtype(output.dtype).itemsize

    o_flat = output.reshape(-1)
    t_flat = target.reshape(-1)

    # Lane alignment: pad only when the element count is not a multiple of 128
    # (padded entries are 0 in both arrays -> contribute nothing to the sum).
    # TODO(synk): a 1D-block kernel could avoid this copy in the rare
    # non-128-aligned case; the common aligned case is already copy-free.
    pad = (-n_elems) % LANES
    if pad:
        o_flat = jnp.pad(o_flat, (0, pad))
        t_flat = jnp.pad(t_flat, (0, pad))

    rows = o_flat.size // LANES
    o2d = o_flat.reshape(rows, LANES)
    t2d = t_flat.reshape(rows, LANES)

    # Block sizing: whole slab if small (block == full dim is always legal),
    # else 1 MiB (f32) blocks whose sublane count (2048) satisfies f32/bf16/i8
    # tiling minimums.
    block_rows = rows if rows <= MAX_BLOCK_ROWS else MAX_BLOCK_ROWS
    num_blocks = pl.cdiv(rows, block_rows)

    # Parallel split of the reduction (both TensorCores on v7x megacore).
    num_splits = 2 if num_blocks >= 2 else 1
    blocks_per_core = pl.cdiv(num_blocks, num_splits)

    ragged_rows = (num_blocks * block_rows != rows)
    ragged_split = (num_splits * blocks_per_core != num_blocks)
    needs_mask = ragged_rows or ragged_split

    def in_index_map(c, i):
        b = c * blocks_per_core + i
        if ragged_split:
            b = jnp.minimum(b, num_blocks - 1)   # clamp virtual tail blocks
        return (b, 0)

    kernel = functools.partial(
        _mse_partial_kernel,
        rows=rows, block_rows=block_rows,
        blocks_per_core=blocks_per_core, needs_mask=needs_mask)

    partials = pl.pallas_call(
        kernel,
        out_shape=jax.ShapeDtypeStruct((num_splits, 1), jnp.float32),
        grid_spec=pltpu.PrefetchScalarGridSpec(
            num_scalar_prefetch=0,
            grid=(num_splits, blocks_per_core),
            in_specs=[
                pl.BlockSpec((block_rows, LANES), in_index_map),
                pl.BlockSpec((block_rows, LANES), in_index_map),
            ],
            out_specs=pl.BlockSpec(
                (1, 1), lambda c, i: (c, 0), memory_space=pltpu.SMEM),
            scratch_shapes=[pltpu.VMEM((block_rows, LANES), jnp.float32)],
        ),
        compiler_params=pltpu.CompilerParams(
            dimension_semantics=("parallel", "arbitrary")),
        cost_estimate=pl.CostEstimate(
            flops=3 * n_elems,
            transcendentals=0,
            bytes_accessed=2 * n_elems * itemsize),
    )(o2d, t2d)

    total = jnp.sum(partials)
    return (total / jnp.float32(n_elems)).astype(output.dtype)


if __name__ == "__main__":
    key = jax.random.PRNGKey(0)
    k1, k2 = jax.random.split(key)
    # Small NCHW-like inputs consistent with a typical regression output.
    x = jax.random.normal(k1, (2, 4, 16, 16), dtype=jnp.float32)
    y = jax.random.normal(k2, (2, 4, 16, 16), dtype=jnp.float32)

    loss = mse_loss(x, y)
    jax.block_until_ready(loss)

    # Cross-check against plain-JAX reference.
    ref = jnp.mean((x - y) ** 2)
    assert jnp.allclose(loss, ref, rtol=1e-6, atol=1e-6), (loss, ref)

    print("KERNEL_OK")
</pallas_src>

<mosaic_0001>
module attributes {stable_mosaic.version = 11 : i64} {
  func.func @_mse_partial_kernel(%arg0: i32, %arg1: i32, %arg2: memref<16x128xf32, #tpu.memory_space<vmem>>, %arg3: memref<16x128xf32, #tpu.memory_space<vmem>>, %arg4: memref<1x1xf32, #tpu.memory_space<smem>>, %arg5: memref<16x128xf32, #tpu.memory_space<vmem>>) attributes {dimension_semantics = [#tpu.dimension_semantics<parallel>, #tpu.dimension_semantics<arbitrary>], iteration_bounds = array<i64: 1, 1>, scalar_prefetch = 0 : i64, scratch_operands = 1 : i64, tpu.core_type = #tpu.core_type<tc>, window_params = [{transform_indices = @transform_0, window_bounds = array<i64: 16, 128>}, {transform_indices = @transform_1, window_bounds = array<i64: 16, 128>}, {transform_indices = @transform_2, window_bounds = array<i64: 1, 1>}]} {
    %c0_i32 = arith.constant 0 : i32
    %0 = arith.cmpi eq, %arg1, %c0_i32 : i32
    %1 = arith.extui %0 : i1 to i32
    %c0_i32_0 = arith.constant 0 : i32
    %2 = arith.cmpi ne, %1, %c0_i32_0 : i32
    scf.if %2 {
      %cst = arith.constant 0.000000e+00 : f32
      %13 = vector.broadcast %cst : f32 to vector<16x128xf32>
      %c0_10 = arith.constant 0 : index
      %c0_11 = arith.constant 0 : index
      %14 = vector.load %arg5[%c0_10, %c0_11] : memref<16x128xf32, #tpu.memory_space<vmem>>, vector<16x128xf32>
      tpu.vector_store %arg5[%c0_10, %c0_11], %13 {strides = array<i32>} : memref<16x128xf32, #tpu.memory_space<vmem>>, vector<16x128xf32>,
    } else {
    }
    %c0 = arith.constant 0 : index
    %c0_1 = arith.constant 0 : index
    %3 = vector.load %arg2[%c0, %c0_1] : memref<16x128xf32, #tpu.memory_space<vmem>>, vector<16x128xf32>
    %c0_2 = arith.constant 0 : index
    %c0_3 = arith.constant 0 : index
    %4 = vector.load %arg3[%c0_2, %c0_3] : memref<16x128xf32, #tpu.memory_space<vmem>>, vector<16x128xf32>
    %5 = arith.subf %3, %4 : vector<16x128xf32>
    %6 = arith.mulf %5, %5 : vector<16x128xf32>
    %c0_4 = arith.constant 0 : index
    %c0_5 = arith.constant 0 : index
    %7 = vector.load %arg5[%c0_4, %c0_5] : memref<16x128xf32, #tpu.memory_space<vmem>>, vector<16x128xf32>
    %8 = arith.addf %7, %6 : vector<16x128xf32>
    %c0_6 = arith.constant 0 : index
    %c0_7 = arith.constant 0 : index
    %9 = vector.load %arg5[%c0_6, %c0_7] : memref<16x128xf32, #tpu.memory_space<vmem>>, vector<16x128xf32>
    tpu.vector_store %arg5[%c0_6, %c0_7], %8 {strides = array<i32>} : memref<16x128xf32, #tpu.memory_space<vmem>>, vector<16x128xf32>,
    %c0_i32_8 = arith.constant 0 : i32
    %10 = arith.cmpi eq, %arg1, %c0_i32_8 : i32
    %11 = arith.extui %10 : i1 to i32
    %c0_i32_9 = arith.constant 0 : i32
    %12 = arith.cmpi ne, %11, %c0_i32_9 : i32
    scf.if %12 {
      %c0_10 = arith.constant 0 : index
      %c0_11 = arith.constant 0 : index
      %13 = vector.load %arg5[%c0_10, %c0_11] : memref<16x128xf32, #tpu.memory_space<vmem>>, vector<16x128xf32>
      %14 = vector.shape_cast %13 : vector<16x128xf32> to vector<1x16x128xf32>
      %cst = arith.constant dense<0.000000e+00> : vector<1xf32>
      %15 = vector.multi_reduction <add>, %14, %cst [1, 2] : vector<1x16x128xf32> to vector<1xf32>
      %16 = vector.shape_cast %15 : vector<1xf32> to vector<1x1x1xf32>
      %17 = vector.extract %16[0, 0, 0] : f32 from vector<1x1x1xf32>
      %c0_12 = arith.constant 0 : index
      %c0_13 = arith.constant 0 : index
      %18 = memref.load %arg4[%c0_12, %c0_13] : memref<1x1xf32, #tpu.memory_space<smem>>
      memref.store %17, %arg4[%c0_12, %c0_13] : memref<1x1xf32, #tpu.memory_space<smem>>
    } else {
    }
    return
  }
  func.func @transform_0(%arg0: i32, %arg1: i32) -> (i32, i32) {
    %c1_i32 = arith.constant 1 : i32
    %0 = arith.muli %arg0, %c1_i32 : i32
    %1 = arith.addi %0, %arg1 : i32
    %c0_i32 = arith.constant 0 : i32
    %c0_i32_0 = arith.constant 0 : i32
    return %1, %c0_i32 : i32, i32
  }
  func.func @transform_1(%arg0: i32, %arg1: i32) -> (i32, i32) {
    %c1_i32 = arith.constant 1 : i32
    %0 = arith.muli %arg0, %c1_i32 : i32
    %1 = arith.addi %0, %arg1 : i32
    %c0_i32 = arith.constant 0 : i32
    %c0_i32_0 = arith.constant 0 : i32
    return %1, %c0_i32 : i32, i32
  }
  func.func @transform_2(%arg0: i32, %arg1: i32) -> (i32, i32) {
    %c0_i32 = arith.constant 0 : i32
    %c0_i32_0 = arith.constant 0 : i32
    return %arg0, %c0_i32 : i32, i32
  }
}

</mosaic_0001>

<bundles_post_ra>
// kernel: tpu_custom_call.1
= control target key start
LH: loop header
LB: loop body
LE: loop exit
PB: predicated region body
PF: predicated region fallthrough
CT: control target
= control target key end

     0   :  { %7 = vsyncpa [#allocation4], 0  ;;  %s194_s0 = inlined_call_operand.hbm [shape: f32[16,128], index: 0, kind: input, shape index: {}]   ;;  %s195_s1 = inlined_call_operand.hbm [shape: f32[16,128], index: 1, kind: input, shape index: {}]   ;;  %s196_s2 = inlined_call_operand.hbm [shape: f32[1,1], index: 2, kind: output, shape index: {}]  }
   0x1   :  { %8 = vsyncpa [#allocation7], 0 }
   0x2   :  { %9 = vsyncpa [#allocation5], 0  ;;  %s165_s9 = smov [#allocation3]  }
   0x3   :  { %s19_s10 = sshll.u32 %s165_s9, 4  ;;  %s20_s10 = int_to_ptr.vmem [resolvable:$true] %s19_s10 }
   0x4   :  { %s119_s11 = scalar_lea.vmem %s20_s10, 256  ;;  %p124_p1 = scmp.lt.s32.totalorder %s20_s10, %s20_s10 }
   0x5   :  { %p120_p0 = scmp.ne.s32.totalorder %s20_s10, %s119_s11  ;;  %p125_p2 = scmp.lt.s32.totalorder %s119_s11, %s119_s11 }
   0x7   :  { %p126_p3 = por %p125_p2, %p124_p1 }
   0x9   :  { %p127_p4 = pnand %p126_p3, %p120_p0 }
   0xb   :  { %130 = shalt.err (!%p127_p4)
}
   0xc   :  { %s166_s12 = smov 128   ;;  %s167_s13 = smov 8  }
   0xd   :  { %25 = dma.hbm_to_vmem [thread:$0]  %s194_s0, 256, %s20_s10, [#allocation4], %s166_s12, %s166_s12, %s167_s13  }
   0xe   :  { %s168_s16 = smov [#allocation6]  }
   0xf   :  { %s35_s17 = sshll.u32 %s168_s16, 4  ;;  %s36_s17 = int_to_ptr.vmem [resolvable:$true] %s35_s17 }
  0x10   :  { %s139_s18 = scalar_lea.vmem %s36_s17, 256  ;;  %p144_p6 = scmp.lt.s32.totalorder %s36_s17, %s36_s17 }
  0x11   :  { %p140_p5 = scmp.ne.s32.totalorder %s36_s17, %s139_s18  ;;  %p145_p7 = scmp.lt.s32.totalorder %s139_s18, %s139_s18 }
  0x13   :  { %p146_p8 = por %p145_p7, %p144_p6 }
  0x15   :  { %p147_p9 = pnand %p146_p8, %p140_p5 }
  0x17   :  { %150 = shalt.err (!%p147_p9)
}
  0x18   :  { %41 = dma.hbm_to_vmem [thread:$0]  %s195_s1, 256, %s36_s17, [#allocation7], %s166_s12, %s166_s12, %s167_s13  }
  0x19   :  { %159 = dma.done.wait [#allocation4], 256  }
  0x1a   :  { %160 = vsyncadd [#allocation4], 4294967040 }
  0x1b   :  { %161 = dma.done.wait [#allocation7], 256  }
  0x1c   :  { %162 = vsyncadd [#allocation7], 4294967040  ;;  %v58_v0 = vld [vmem:[#allocation3] sm:$0xff]  ;;  %v59_v1 = vld [vmem:[#allocation3 + $0x8] sm:$0xff]  ;;  %s169_s1 = smov [#allocation8]  }
  0x1d   :  { %v60_v2 = vld [vmem:[#allocation6] sm:$0xff]  ;;  %v61_v3 = vld [vmem:[#allocation6 + $0x8] sm:$0xff] }
  0x1e   :  { %v62_v4 = vsub.f32 %v58_v0, %v60_v2  ;;  %v63_v5 = vsub.f32 %v59_v1, %v61_v3 }
  0x20   :  { %v64_v6 = vmul.f32 %v62_v4, %v62_v4  ;;  %v65_v7 = vmul.f32 %v63_v5, %v63_v5 }
  0x22   :  { %v77_v8 = vadd.f32 %v65_v7, %v64_v6 }
  0x24   :  { %78 = vadd.xlane.f32.xlu0 %v77_v8 }
  0xad   :  { %v79_v9 = vpop.xlane.xlu0 %78 }
  0xae   :  { %v80_v10 = vrot.slane %v79_v9, 4 }
  0xb0   :  { %v81_v11 = vadd.f32 %v80_v10, %v79_v9 }
  0xb2   :  { %v82_v12 = vrot.slane %v81_v11, 2 }
  0xb4   :  { %v83_v13 = vadd.f32 %v82_v12, %v81_v11 }
  0xb6   :  { %v84_v14 = vrot.slane %v83_v13, 1 }
  0xb8   :  { %v85_v15 = vadd.f32 %v84_v14, %v83_v13 }
  0xba   :  { %104 = vpush %v85_v15 }
  0xeb   :  { %s105_s0 = spop %104 }
  0xec   :  { %88 = sst [smem:[#allocation8]] %s105_s0 }
  0xed   :  { %96 = dma.smem_to_hbm %s169_s1, 16, %s196_s2, [#allocation5]  }
  0xee   :  { %163 = dma.done.wait [#allocation5], 16  }
  0xef   :  { %164 = vsyncadd [#allocation5], 4294967280 }
  0xf0   :  { %100 = sfence }
  0xf1   :  { %101 = vsyncpa [#allocation4], 1 }
  0xf2   :  { %102 = vsyncpa [#allocation7], 1 }
  0xf3   :  { %103 = vsyncpa [#allocation5], 1 }

</bundles_post_ra>
